<compile_context>
chip_gen: v7x
topology: tpu7x:2x2x1
jax: 0.10.0
libtpu: 0.0.40
codegen_flags: <defaults>
</compile_context>

<pallas_src>
import functools

import jax
import jax.numpy as jnp
from jax.experimental import pallas as pl
from jax.experimental.pallas import tpu as pltpu


HIDDEN = 128   # affine1 output width
IN_AUG = 8     # x padded from 4 features to 8 (col 4 == 1.0 carries the bias)
OUT_W = 8      # fused-head output width: cols 0-1 = action probs, col 2 = value


def policy_kernel(x_ref, w1_ref, w23_ref, b23_ref, out_ref):
    # ---- Layer 1 (+ bias) as ONE small MXU matmul ------------------------
    # x_ref: (TB, 8) with cols 0-3 = features, col 4 = 1.0, cols 5-7 = 0.
    # w1_ref: (8, 128) with rows 0-3 = W1, row 4 = b1, rows 5-7 = 0.
    h = jnp.dot(x_ref[...], w1_ref[...], preferred_element_type=jnp.float32)
    h = jnp.maximum(h, 0.0)                                   # (TB, 128)

    # ---- Fused actor+critic head: one MXU matmul, 8-lane result ----------
    # w23: (128, 8) with cols 0-1 = action_head, col 2 = value_head, rest 0.
    z = jnp.dot(h, w23_ref[...], preferred_element_type=jnp.float32) + b23_ref[...]

    # ---- Softmax over the 2 real logit lanes only -------------------------
    # z is only 8 lanes wide, so the axis=-1 reductions are short XLU reduces
    # (3 stages) instead of the old 128-lane (7-stage) ones.
    col = jax.lax.broadcasted_iota(jnp.int32, z.shape, 1)
    logits = jnp.where(col < 2, z, jnp.float32(-1e30))        # mask lanes 2..7
    m = jnp.max(logits, axis=-1, keepdims=True)
    e = jnp.exp(logits - m)                                   # masked lanes -> exactly 0
    s = jnp.sum(e, axis=-1, keepdims=True)
    r = pl.reciprocal(s, approx=True)                         # EUP vrcp (own slot)
    r = r * (2.0 - s * r)                                     # one Newton step (~1e-7 rel)
    probs = e * r

    # cols 0-1 = probs, col 2 = raw value, cols 3-7 = 0
    out_ref[...] = jnp.where(col < 2, probs, jnp.where(col == 2, z, 0.0))


def _round_up(n, m):
    return ((n + m - 1) // m) * m


def _choose_tile(batch, max_tile):
    """Pick a batch tile.

    - Tiny batches (typical RL rollout step): one minimal tile; they are
      launch/overhead bound, splitting only adds per-step cost.
    - Medium batches: two balanced tiles -> grid of 2 so v7x's second
      TensorCore gets work, and padding is at most 7 rows.
    - Large batches: max_tile-sized tiles to amortize the ~0.35us/step
      grid overhead.
    """
    b8 = _round_up(batch, 8)
    if b8 < 256:
        return b8
    if b8 <= 2 * max_tile:
        return _round_up(-(-b8 // 2), 8)
    return max_tile


def pack_params(w1, b1, w2, b2, w3, b3):
    """One-time packing of the three Linear layers into the kernel layout.

    Hoisted out of the per-call path so the fused weights are not
    re-materialized on every forward step.
    """
    w1 = jnp.asarray(w1, jnp.float32).reshape(4, HIDDEN)
    b1 = jnp.asarray(b1, jnp.float32).reshape(1, HIDDEN)
    w2 = jnp.asarray(w2, jnp.float32).reshape(HIDDEN, 2)
    b2 = jnp.asarray(b2, jnp.float32).reshape(1, 2)
    w3 = jnp.asarray(w3, jnp.float32).reshape(HIDDEN, 1)
    b3 = jnp.asarray(b3, jnp.float32).reshape(1, 1)

    # Layer-1 weight augmented with the bias as row 4 (x gets a matching 1-col).
    w1_aug = jnp.zeros((IN_AUG, HIDDEN), jnp.float32)
    w1_aug = w1_aug.at[0:4, :].set(w1).at[4:5, :].set(b1)

    # Actor (cols 0-1) + critic (col 2) fused into one narrow head.
    w23 = jnp.zeros((HIDDEN, OUT_W), jnp.float32)
    w23 = w23.at[:, 0:2].set(w2).at[:, 2:3].set(w3)
    b23 = jnp.zeros((1, OUT_W), jnp.float32)
    b23 = b23.at[:, 0:2].set(b2).at[:, 2:3].set(b3)
    return w1_aug, w23, b23


@functools.partial(jax.jit, static_argnames=("max_tile",))
def policy_forward(x, w1_aug, w23, b23, *, max_tile=1024):
    """Returns (action_prob [B,2], state_values [B,1]) matching Policy.forward."""
    B = x.shape[0]
    tile_b = _choose_tile(B, max_tile)
    Bp = _round_up(_round_up(B, 8), tile_b)

    # Augment x: cols 0-3 = features, col 4 = 1.0 (bias lane), cols 5-7 = 0,
    # then pad the batch to a multiple of the tile (padded rows are sliced off).
    ones = jnp.ones((B, 1), jnp.float32)
    zeros = jnp.zeros((B, IN_AUG - 5), jnp.float32)
    x_aug = jnp.concatenate([x.astype(jnp.float32), ones, zeros], axis=1)
    if Bp != B:
        x_aug = jnp.pad(x_aug, ((0, Bp - B), (0, 0)))

    out = pl.pallas_call(
        policy_kernel,
        out_shape=jax.ShapeDtypeStruct((Bp, OUT_W), jnp.float32),
        grid=(Bp // tile_b,),
        in_specs=[
            pl.BlockSpec((tile_b, IN_AUG), lambda i: (i, 0)),   # x: batch-tiled
            pl.BlockSpec((IN_AUG, HIDDEN), lambda i: (0, 0)),   # weights: VMEM-resident
            pl.BlockSpec((HIDDEN, OUT_W), lambda i: (0, 0)),
            pl.BlockSpec((1, OUT_W), lambda i: (0, 0)),
        ],
        out_specs=pl.BlockSpec((tile_b, OUT_W), lambda i: (i, 0)),
        compiler_params=pltpu.CompilerParams(
            dimension_semantics=("parallel",)),                 # megacore-shardable on v7x
    )(x_aug, w1_aug, w23, b23)

    action_prob = out[:B, 0:2]
    state_values = out[:B, 2:3]
    return action_prob, state_values


def init_params(key):
    """Deterministic init mimicking nn.Linear's uniform(-1/sqrt(fan_in), ...)."""
    k1, k2, k3, k4, k5, k6 = jax.random.split(key, 6)

    def lin(kw, kb, fan_in, fan_out):
        bound = 1.0 / jnp.sqrt(jnp.float32(fan_in))
        w = jax.random.uniform(kw, (fan_in, fan_out), jnp.float32, -bound, bound)
        b = jax.random.uniform(kb, (1, fan_out), jnp.float32, -bound, bound)
        return w, b

    w1, b1 = lin(k1, k2, 4, HIDDEN)      # affine1
    w2, b2 = lin(k3, k4, HIDDEN, 2)      # action_head
    w3, b3 = lin(k5, k6, HIDDEN, 1)      # value_head
    return w1, b1, w2, b2, w3, b3


def _reference(x, w1, b1, w2, b2, w3, b3):
    hp = jnp.dot(x, w1, precision=jax.lax.Precision.HIGHEST) + b1
    hp = jnp.maximum(hp, 0.0)
    probs = jax.nn.softmax(
        jnp.dot(hp, w2, precision=jax.lax.Precision.HIGHEST) + b2, axis=-1)
    values = jnp.dot(hp, w3, precision=jax.lax.Precision.HIGHEST) + b3
    return probs, values


if __name__ == "__main__":
    key = jax.random.PRNGKey(0)
    k_params, k_x, k_x2 = jax.random.split(key, 3)

    params = init_params(k_params)
    packed = pack_params(*params)        # one-time fused-weight packing

    # CartPole-style observations: batch of 8 states, 4 features each.
    x = jax.random.normal(k_x, (8, 4), jnp.float32)
    action_prob, state_values = policy_forward(x, *packed)
    jax.block_until_ready((action_prob, state_values))

    probs_ref, values_ref = _reference(x, *params)
    assert action_prob.shape == (8, 2) and state_values.shape == (8, 1)
    assert jnp.allclose(action_prob, probs_ref, atol=1e-4)
    assert jnp.allclose(state_values, values_ref, atol=1e-4)
    assert jnp.allclose(jnp.sum(action_prob, axis=-1), 1.0, atol=1e-4)

    # Secondary check: odd batch (exercises batch padding + output slicing).
    x2 = jax.random.normal(k_x2, (5, 4), jnp.float32)
    p2, v2 = policy_forward(x2, *packed)
    jax.block_until_ready((p2, v2))
    p2_ref, v2_ref = _reference(x2, *params)
    assert p2.shape == (5, 2) and v2.shape == (5, 1)
    assert jnp.allclose(p2, p2_ref, atol=1e-4)
    assert jnp.allclose(v2, v2_ref, atol=1e-4)

    print("KERNEL_OK")
</pallas_src>

<mosaic_0001>
module attributes {stable_mosaic.version = 11 : i64} {
  func.func @policy_kernel(%arg0: i32, %arg1: memref<8x8xf32, #tpu.memory_space<vmem>>, %arg2: memref<8x128xf32, #tpu.memory_space<vmem>>, %arg3: memref<128x8xf32, #tpu.memory_space<vmem>>, %arg4: memref<1x8xf32, #tpu.memory_space<vmem>>, %arg5: memref<8x8xf32, #tpu.memory_space<vmem>>) attributes {dimension_semantics = [#tpu.dimension_semantics<parallel>], iteration_bounds = array<i64: 1>, scalar_prefetch = 0 : i64, scratch_operands = 0 : i64, tpu.core_type = #tpu.core_type<tc>, window_params = [{transform_indices = @transform_0, window_bounds = array<i64: 8, 8>}, {pipeline_mode = #tpu.pipeline_mode<synchronous>, transform_indices = @transform_1, window_bounds = array<i64: 8, 128>}, {pipeline_mode = #tpu.pipeline_mode<synchronous>, transform_indices = @transform_2, window_bounds = array<i64: 128, 8>}, {pipeline_mode = #tpu.pipeline_mode<synchronous>, transform_indices = @transform_3, window_bounds = array<i64: 1, 8>}, {transform_indices = @transform_4, window_bounds = array<i64: 8, 8>}]} {
    %c0 = arith.constant 0 : index
    %c0_0 = arith.constant 0 : index
    %0 = vector.load %arg1[%c0, %c0_0] : memref<8x8xf32, #tpu.memory_space<vmem>>, vector<8x8xf32>
    %c0_1 = arith.constant 0 : index
    %c0_2 = arith.constant 0 : index
    %1 = vector.load %arg2[%c0_1, %c0_2] : memref<8x128xf32, #tpu.memory_space<vmem>>, vector<8x128xf32>
    %cst = arith.constant dense<0.000000e+00> : vector<8x128xf32>
    %2 = tpu.matmul %0, %1, %cst {dimension_numbers = #tpu.dot_dimension_numbers<[1], [0], [0], [1], [0, 0, 1, 1], [], []>} : vector<8x8xf32>, vector<8x128xf32>, vector<8x128xf32> -> vector<8x128xf32>
    %cst_3 = arith.constant 0.000000e+00 : f32
    %3 = vector.broadcast %cst_3 : f32 to vector<8x128xf32>
    %4 = arith.maximumf %2, %3 : vector<8x128xf32>
    %c0_4 = arith.constant 0 : index
    %c0_5 = arith.constant 0 : index
    %5 = vector.load %arg3[%c0_4, %c0_5] : memref<128x8xf32, #tpu.memory_space<vmem>>, vector<128x8xf32>
    %cst_6 = arith.constant dense<0.000000e+00> : vector<8x8xf32>
    %6 = tpu.matmul %4, %5, %cst_6 {dimension_numbers = #tpu.dot_dimension_numbers<[1], [0], [0], [1], [0, 0, 1, 1], [], []>} : vector<8x128xf32>, vector<128x8xf32>, vector<8x8xf32> -> vector<8x8xf32>
    %c0_7 = arith.constant 0 : index
    %c0_8 = arith.constant 0 : index
    %7 = vector.load %arg4[%c0_7, %c0_8] : memref<1x8xf32, #tpu.memory_space<vmem>>, vector<1x8xf32>
    %8 = vector.broadcast %7 : vector<1x8xf32> to vector<8x8xf32>
    %9 = arith.addf %6, %8 : vector<8x8xf32>
    %10 = tpu.iota {dimensions = array<i32: 1>} : vector<8x8xi32>
    %c2_i32 = arith.constant 2 : i32
    %11 = vector.broadcast %c2_i32 : i32 to vector<8x8xi32>
    %12 = arith.cmpi slt, %10, %11 : vector<8x8xi32>
    %cst_9 = arith.constant -1.000000e+30 : f32
    %13 = vector.broadcast %cst_9 : f32 to vector<8x8xf32>
    %14 = arith.select %12, %9, %13 : vector<8x8xi1>, vector<8x8xf32>
    %cst_10 = arith.constant dense<0xFF800000> : vector<8xf32>
    %15 = vector.multi_reduction <maximumf>, %14, %cst_10 [1] : vector<8x8xf32> to vector<8xf32>
    %16 = vector.shape_cast %15 : vector<8xf32> to vector<8x1xf32>
    %17 = vector.broadcast %16 : vector<8x1xf32> to vector<8x8xf32>
    %18 = arith.subf %14, %17 : vector<8x8xf32>
    %19 = math.exp %18 : vector<8x8xf32>
    %cst_11 = arith.constant dense<0.000000e+00> : vector<8xf32>
    %20 = vector.multi_reduction <add>, %19, %cst_11 [1] : vector<8x8xf32> to vector<8xf32>
    %21 = vector.shape_cast %20 : vector<8xf32> to vector<8x1xf32>
    %22 = tpu.reciprocal %21 {approx = true} : vector<8x1xf32> -> vector<8x1xf32>
    %23 = arith.mulf %21, %22 : vector<8x1xf32>
    %cst_12 = arith.constant 2.000000e+00 : f32
    %24 = vector.broadcast %cst_12 : f32 to vector<8x1xf32>
    %25 = arith.subf %24, %23 : vector<8x1xf32>
    %26 = arith.mulf %22, %25 : vector<8x1xf32>
    %27 = vector.broadcast %26 : vector<8x1xf32> to vector<8x8xf32>
    %28 = arith.mulf %19, %27 : vector<8x8xf32>
    %c2_i32_13 = arith.constant 2 : i32
    %29 = vector.broadcast %c2_i32_13 : i32 to vector<8x8xi32>
    %30 = arith.cmpi slt, %10, %29 : vector<8x8xi32>
    %c2_i32_14 = arith.constant 2 : i32
    %31 = vector.broadcast %c2_i32_14 : i32 to vector<8x8xi32>
    %32 = arith.cmpi eq, %10, %31 : vector<8x8xi32>
    %cst_15 = arith.constant 0.000000e+00 : f32
    %33 = vector.broadcast %cst_15 : f32 to vector<8x8xf32>
    %34 = arith.select %32, %9, %33 : vector<8x8xi1>, vector<8x8xf32>
    %35 = arith.select %30, %28, %34 : vector<8x8xi1>, vector<8x8xf32>
    %c0_16 = arith.constant 0 : index
    %c0_17 = arith.constant 0 : index
    %36 = vector.load %arg5[%c0_16, %c0_17] : memref<8x8xf32, #tpu.memory_space<vmem>>, vector<8x8xf32>
    tpu.vector_store %arg5[%c0_16, %c0_17], %35 {strides = array<i32>} : memref<8x8xf32, #tpu.memory_space<vmem>>, vector<8x8xf32>,
    return
  }
  func.func @transform_0(%arg0: i32) -> (i32, i32) {
    %c0_i32 = arith.constant 0 : i32
    %c0_i32_0 = arith.constant 0 : i32
    return %arg0, %c0_i32 : i32, i32
  }
  func.func @transform_1(%arg0: i32) -> (i32, i32) {
    %c0_i32 = arith.constant 0 : i32
    %c0_i32_0 = arith.constant 0 : i32
    %c0_i32_1 = arith.constant 0 : i32
    return %c0_i32, %c0_i32_0 : i32, i32
  }
  func.func @transform_2(%arg0: i32) -> (i32, i32) {
    %c0_i32 = arith.constant 0 : i32
    %c0_i32_0 = arith.constant 0 : i32
    %c0_i32_1 = arith.constant 0 : i32
    return %c0_i32, %c0_i32_0 : i32, i32
  }
  func.func @transform_3(%arg0: i32) -> (i32, i32) {
    %c0_i32 = arith.constant 0 : i32
    %c0_i32_0 = arith.constant 0 : i32
    %c0_i32_1 = arith.constant 0 : i32
    return %c0_i32, %c0_i32_0 : i32, i32
  }
  func.func @transform_4(%arg0: i32) -> (i32, i32) {
    %c0_i32 = arith.constant 0 : i32
    %c0_i32_0 = arith.constant 0 : i32
    return %arg0, %c0_i32 : i32, i32
  }
}

</mosaic_0001>

<bundles_post_ra>
// kernel: policy_forward.1
= control target key start
LH: loop header
LB: loop body
LE: loop exit
PB: predicated region body
PF: predicated region fallthrough
CT: control target
= control target key end

     0   :  { %vm19_vm0 = vcmask 64512   ;;  %v305_v0 = vmov 0.0   ;;  %vm306_vm1 = vmmov 0   ;;  %v307_v4 = vmov 0.0|0.0   ;;  %s399_s1 = inlined_call_operand.vmem [shape: f32[8,128], index: 1, kind: input, shape index: {}]   ;;  %s400_s0 = inlined_call_operand.vmem [shape: f32[8,8], index: 0, kind: input, shape index: {}]   ;;  %s401_s2 = inlined_call_operand.vmem [shape: f32[128,8], index: 2, kind: input, shape index: {}]   ;;  %s402_s3 = inlined_call_operand.vmem [shape: f32[1,8], index: 3, kind: input, shape index: {}]   ;;  %s403_s4 = inlined_call_operand.vmem [shape: f32[8,8], index: 4, kind: output, shape index: {}]  }
   0x1   :  { %234 = vmatprep.subr.mxu0 %v305_v0  ;;  %v18_v1 = vld [vmem:[%s399_s1] sm:$0xff]  ;;  %236 = vmatprep.mubr.msk.f32.mxu0 %vm306_vm1, %v305_v0  ;;  %v95_v5 = vld [vmem:[%s401_s2 + $0x8] sm:$0xff]  ;;  %v96_v6 = vld [vmem:[%s401_s2 + $0x10] sm:$0xff]  ;;  %v187_v31 = vlaneseq }
   0x2   :  { %v17_v2 = vld [vmem:[%s400_s0] sm:$0xff]  ;;  %235 = vmatpush3.msra.mxu0 %v18_v1  ;;  %274 = vmatprep.subr.bf16.mxu1 %v307_v4  ;;  %v97_v7 = vld [vmem:[%s401_s2 + $0x18] sm:$0xff]  ;;  %v99_v11 = vld [vmem:[%s401_s2 + $0x28] sm:$0xff] }
   0x3   :  { %v94_v3 = vld [vmem:[%s401_s2] sm:$0xff]  ;;  %237 = vmatmul.mubr.msk.f32.vlgmr.msra.gmra.mrb[0].mxu0 %vm19_vm0, %v17_v2  ;;  %271 = vmatprep.mubr.msk.f32.mxu1 %vm306_vm1, %v305_v0  ;;  %v278_v9 = vpack.c.bf16 %v97_v7, %v96_v6  ;;  %v100_v13 = vld [vmem:[%s401_s2 + $0x30] sm:$0xff]  ;;  %v101_v14 = vld [vmem:[%s401_s2 + $0x38] sm:$0xff]  ;;  %v188_v32 = vand.u32 127, %v187_v31 }
   0x4   :  { %v275_v8 = vpack.c.bf16 %v95_v5, %v94_v3  ;;  %v98_v10 = vld [vmem:[%s401_s2 + $0x20] sm:$0xff]  ;;  %v284_v15 = vpack.c.bf16 %v101_v14, %v100_v13  ;;  %v103_v17 = vld [vmem:[%s401_s2 + $0x48] sm:$0xff]  ;;  %v104_v19 = vld [vmem:[%s401_s2 + $0x50] sm:$0xff] }
   0x5   :  { %v281_v12 = vpack.c.bf16 %v99_v11, %v98_v10  ;;  %v102_v16 = vld [vmem:[%s401_s2 + $0x40] sm:$0xff]  ;;  %v105_v20 = vld [vmem:[%s401_s2 + $0x58] sm:$0xff]  ;;  %v107_v23 = vld [vmem:[%s401_s2 + $0x68] sm:$0xff]  ;;  %vm205_vm2 = vcmp.eq.s32.totalorder %v188_v32, 2  ;;  %vm189_vm3 = vcmp.lt.s32.totalorder %v188_v32, 2 }
   0x6   :  { %276 = vmatpush3.bf16.msra.mxu1 %v275_v8  ;;  %v287_v18 = vpack.c.bf16 %v103_v17, %v102_v16  ;;  %v290_v21 = vpack.c.bf16 %v105_v20, %v104_v19  ;;  %v106_v22 = vld [vmem:[%s401_s2 + $0x60] sm:$0xff]  ;;  %v108_v25 = vld [vmem:[%s401_s2 + $0x70] sm:$0xff]  ;;  %v109_v26 = vld [vmem:[%s401_s2 + $0x78] sm:$0xff] }
   0x7   :  { %277 = vmatprep.subr.bf16.mxu1 %v307_v4  ;;  %v293_v24 = vpack.c.bf16 %v107_v23, %v106_v22  ;;  %v296_v27 = vpack.c.bf16 %v109_v26, %v108_v25  ;;  %v214_v33 = vld [vmem:[%s402_s3] ss:$0 sm:$0xff] }
   0xa   :  { %279 = vmatpush3.bf16.msra.mxu1 %v278_v9 }
   0xb   :  { %280 = vmatprep.subr.bf16.mxu1 %v307_v4 }
   0xe   :  { %282 = vmatpush3.bf16.msra.mxu1 %v281_v12 }
   0xf   :  { %283 = vmatprep.subr.bf16.mxu1 %v307_v4 }
  0x12   :  { %285 = vmatpush3.bf16.msra.mxu1 %v284_v15 }
  0x13   :  { %286 = vmatprep.subr.bf16.mxu1 %v307_v4 }
  0x16   :  { %288 = vmatpush3.bf16.msra.mxu1 %v287_v18 }
  0x17   :  { %289 = vmatprep.subr.bf16.mxu1 %v307_v4 }
  0x1a   :  { %291 = vmatpush3.bf16.msra.mxu1 %v290_v21 }
  0x1b   :  { %292 = vmatprep.subr.bf16.mxu1 %v307_v4 }
  0x1e   :  { %294 = vmatpush3.bf16.msra.mxu1 %v293_v24 }
  0x1f   :  { %295 = vmatprep.subr.bf16.mxu1 %v307_v4 }
  0x22   :  { %297 = vmatpush3.bf16.msra.mxu1 %v296_v27 }
  0xd6   :  { %v89_v28 = vpop.f32.mrb[0].mxu0 }
  0xd7   :  { %v93_v29 = vmax.f32 %v89_v28, 0.0  ;;  %v238_v30 = vpop.f32.mrb[1].mxu0 }
  0xd9   :  { %272 = vmatmul.mubr.f32.vlgmr.msra.gmra.mrb[0].mxu1 %v93_v29 }
 0x1ac   :  { %v183_v34 = vpop.f32.mrb[0].mxu1 }
 0x1ad   :  { %v184_v35 = vadd.f32 %v214_v33, %v183_v34  ;;  %v273_v36 = vpop.f32.mrb[1].mxu1 }
 0x1af   :  { %v206_v37 = vsel %vm205_vm2, %v184_v35, 0.0  ;;  %v190_v38 = vsel %vm189_vm3, %v184_v35, -1e+30 }
 0x1b0   :  { %v191_v39 = vsel %vm19_vm0, %v190_v38, -inf }
 0x1b1   :  { %192 = vmax.xlane.f32.xlu0 %v191_v39 }
 0x23e   :  { %v193_v40 = vpop.xlane.xlu0 %192 }
 0x23f   :  { %v194_v41 = vsub.f32 %v190_v38, %v193_v40 }
 0x241   :  { %v195_v42 = vmul.f32 1.442695, %v194_v41 }
 0x243   :  { %301 = vpow2.f32 %v195_v42 }
 0x24d   :  { %v302_v43 = vpop.eup %301 }
 0x24e   :  { %v197_v44 = vsel %vm19_vm0, %v302_v43, 0.0 }
 0x24f   :  { %198 = vadd.xlane.f32.xlu0 %v197_v44 }
 0x2dc   :  { %v199_v45 = vpop.xlane.xlu0 %198 }
 0x2dd   :  { %303 = vrcp.f32 %v199_v45 }
 0x2e7   :  { %v304_v46 = vpop.eup %303 }
 0x2e8   :  { %v201_v47 = vmul.f32 %v304_v46, %v199_v45 }
 0x2ea   :  { %v202_v48 = vsub.f32 2.0, %v201_v47 }
 0x2ec   :  { %v203_v49 = vmul.f32 %v304_v46, %v202_v48 }
 0x2ee   :  { %v204_v50 = vmul.f32 %v302_v43, %v203_v49 }
 0x2f0   :  { %v207_v51 = vsel %vm189_vm3, %v204_v50, %v206_v37 }
 0x2f1   :  { %208 = vst.msk [vmem:[%s403_s4] sm:$0xff] %vm19_vm0, %v207_v51 }

</bundles_post_ra>
